<compile_context>
chip_gen: v6e
topology: v6e:2x2x1
jax: 0.10.0
libtpu: 0.0.40
codegen_flags: <defaults>
</compile_context>

<pallas_src>
import jax
import jax.numpy as jnp
import numpy as np
from jax import lax
from jax.experimental import pallas as pl
from jax.experimental.pallas import tpu as pltpu

_EPS = 1e-5  # nn.BatchNorm1d default


# --------------------------------------------------------------------------
# VMEM budget helpers (generation-aware)
# --------------------------------------------------------------------------
def _vmem_capacity_bytes():
    try:
        info = pltpu.get_tpu_info()
        cap = getattr(info, "vmem_capacity_bytes", None)
        if cap:
            return int(cap)
    except Exception:
        pass
    return 64 << 20  # conservative fallback (v7x per-core VMEM)


def _pad_batch(a, b_pad):
    if a.shape[0] == b_pad:
        return a
    widths = [(0, b_pad - a.shape[0])] + [(0, 0)] * (a.ndim - 1)
    return jnp.pad(a, widths)


# --------------------------------------------------------------------------
# Pass 1: per-channel sum / sum-of-squares (reduction over batch * spatial).
# Grid: (NC cores [parallel], M batch-blocks per core [arbitrary]).
# Outputs: per-core partial sums, shape (NC, F, 1), combined in the wrapper.
# --------------------------------------------------------------------------
def _bn_stats_kernel(x_ref, sum_ref, sq_ref):
    @pl.when(pl.program_id(1) == 0)
    def _():
        sum_ref[...] = jnp.zeros_like(sum_ref)
        sq_ref[...] = jnp.zeros_like(sq_ref)

    x = x_ref[...].astype(jnp.float32)            # (TB1, F, T)
    # Batch-first reduction: plain cross-vreg VPU adds (4 slots, slack).
    xs = jnp.sum(x, axis=0)                       # (F, T)
    xq = jnp.sum(x * x, axis=0)                   # (F, T)
    # Single lane (XLU) reduce over T per block; result stays sublane-resident.
    sum_ref[...] += jnp.sum(xs, axis=-1, keepdims=True)[None]   # (1, F, 1)
    sq_ref[...] += jnp.sum(xq, axis=-1, keepdims=True)[None]    # (1, F, 1)


# --------------------------------------------------------------------------
# Pass 2: fused conditional-affine apply.  Pure lane-aligned multiply-add:
#   out = x * scale + shift      (scale/shift pre-folded, shaped (TB, F, 1))
# --------------------------------------------------------------------------
def _cbn_apply_kernel(x_ref, scale_ref, shift_ref, o_ref):
    o_ref[...] = (x_ref[...] * scale_ref[...] + shift_ref[...]).astype(o_ref.dtype)


# --------------------------------------------------------------------------
# Wrapper
# --------------------------------------------------------------------------
def cbatchnorm1d_pallas(x, c, params, *, eps=_EPS):
    """x: (B, f_dim, T), c: (B, c_dim), params = (Wg, bg, Wb, bb) with
    Wg/Wb stored (c_dim, f_dim) so gamma = c @ Wg + bg."""
    wg, bg, wb, bb = params
    B, F, T = x.shape
    itemsize = int(jnp.dtype(x.dtype).itemsize)

    cap_bytes = _vmem_capacity_bytes()
    tile_budget = (cap_bytes * 3) // 8          # ~48 MiB on 128 MiB parts, ~24 MiB on 64
    vmem_limit = int((cap_bytes * 3) // 4)      # explicit scoped-VMEM limit

    # ---------------- pass 1: per-channel sum / sumsq ----------------------
    nc = 2 if B >= 2 else 1                     # leading core-parallel axis (v7x)
    cap1 = max(1, tile_budget // max(1, 2 * F * T * itemsize))   # x double-buffered only
    tb1 = max(1, min(cap1, pl.cdiv(B, nc)))
    m1 = pl.cdiv(B, nc * tb1)
    b_pad1 = nc * m1 * tb1
    x1 = _pad_batch(x, b_pad1)                  # zero rows do not perturb sums

    stats_sum, stats_sq = pl.pallas_call(
        _bn_stats_kernel,
        out_shape=(jax.ShapeDtypeStruct((nc, F, 1), jnp.float32),
                   jax.ShapeDtypeStruct((nc, F, 1), jnp.float32)),
        grid=(nc, m1),
        in_specs=[pl.BlockSpec((tb1, F, T), lambda core, b: (core * m1 + b, 0, 0))],
        out_specs=(pl.BlockSpec((1, F, 1), lambda core, b: (core, 0, 0)),
                   pl.BlockSpec((1, F, 1), lambda core, b: (core, 0, 0))),
        compiler_params=pltpu.CompilerParams(
            dimension_semantics=("parallel", "arbitrary"),
            vmem_limit_bytes=vmem_limit),
        cost_estimate=pl.CostEstimate(
            flops=3 * b_pad1 * F * T,
            transcendentals=0,
            bytes_accessed=b_pad1 * F * T * itemsize + 2 * nc * F * 4),
    )(x1)

    # ---------------- small O(B*F) math, hoisted to plain XLA --------------
    n_total = float(B * T)
    ssum = jnp.sum(stats_sum, axis=(0, 2))                       # (F,)
    ssq = jnp.sum(stats_sq, axis=(0, 2))                         # (F,)
    mean = ssum / n_total
    var = jnp.maximum(ssq / n_total - mean * mean, 0.0)          # biased variance
    inv_std = lax.rsqrt(var + eps)

    gamma = c.astype(jnp.float32) @ wg.astype(jnp.float32) + bg  # (B, F)
    beta = c.astype(jnp.float32) @ wb.astype(jnp.float32) + bb   # (B, F)
    scale = gamma * inv_std[None, :]                             # (B, F)
    shift = beta - scale * mean[None, :]                         # (B, F)

    # ---------------- pass 2: fused apply ----------------------------------
    cap2 = max(1, tile_budget // max(1, 4 * F * T * itemsize))   # x + out double-buffered
    tb2 = max(1, min(cap2, pl.cdiv(B, 2))) if B >= 2 else 1      # keep nb2 >= 2
    nb2 = pl.cdiv(B, tb2)
    b_pad2 = nb2 * tb2

    x2 = _pad_batch(x, b_pad2)
    scale3 = _pad_batch(scale, b_pad2)[:, :, None].astype(jnp.float32)  # (B_pad, F, 1)
    shift3 = _pad_batch(shift, b_pad2)[:, :, None].astype(jnp.float32)  # (B_pad, F, 1)

    out = pl.pallas_call(
        _cbn_apply_kernel,
        out_shape=jax.ShapeDtypeStruct((b_pad2, F, T), x.dtype),
        grid=(nb2,),
        in_specs=[
            pl.BlockSpec((tb2, F, T), lambda b: (b, 0, 0)),      # x
            pl.BlockSpec((tb2, F, 1), lambda b: (b, 0, 0)),      # scale
            pl.BlockSpec((tb2, F, 1), lambda b: (b, 0, 0)),      # shift
        ],
        out_specs=pl.BlockSpec((tb2, F, T), lambda b: (b, 0, 0)),
        compiler_params=pltpu.CompilerParams(
            dimension_semantics=("parallel",),
            vmem_limit_bytes=vmem_limit),
        cost_estimate=pl.CostEstimate(
            flops=2 * b_pad2 * F * T,
            transcendentals=0,
            bytes_accessed=2 * b_pad2 * F * T * itemsize + 2 * b_pad2 * F * 4),
    )(x2, scale3, shift3)

    if b_pad2 != B:
        out = out[:B]
    return out


# --------------------------------------------------------------------------
# Pure-JAX reference mirroring the PyTorch forward (training-mode BN).
# --------------------------------------------------------------------------
def cbatchnorm1d_ref(x, c, params, *, eps=_EPS):
    wg, bg, wb, bb = params
    gamma = c @ wg + bg                                          # (B, F)
    beta = c @ wb + bb                                           # (B, F)
    mean = jnp.mean(x, axis=(0, 2))                              # (F,)
    var = jnp.mean((x - mean[None, :, None]) ** 2, axis=(0, 2))  # biased
    net = (x - mean[None, :, None]) / jnp.sqrt(var[None, :, None] + eps)
    return gamma[:, :, None] * net + beta[:, :, None]


if __name__ == "__main__":
    # Small shapes consistent with the module: B=8, c_dim=8, f_dim=16, T=32.
    B, c_dim, f_dim, T = 8, 8, 16, 32

    key = jax.random.PRNGKey(0)
    kx, kc, k1, k2 = jax.random.split(key, 4)

    x = jax.random.normal(kx, (B, f_dim, T), jnp.float32)
    c = jax.random.normal(kc, (B, c_dim), jnp.float32)

    # Non-degenerate weights (the module's reset_parameters would give
    # gamma==1, beta==0, making the conditional path trivial); biases match
    # reset_parameters (gamma bias = 1, beta bias = 0).
    wg = 0.1 * jax.random.normal(k1, (c_dim, f_dim), jnp.float32)
    bg = jnp.ones((f_dim,), jnp.float32)
    wb = 0.1 * jax.random.normal(k2, (c_dim, f_dim), jnp.float32)
    bb = jnp.zeros((f_dim,), jnp.float32)
    params = (wg, bg, wb, bb)

    out = cbatchnorm1d_pallas(x, c, params)
    out = jax.block_until_ready(out)

    ref = cbatchnorm1d_ref(x, c, params)
    np.testing.assert_allclose(np.asarray(out), np.asarray(ref),
                               rtol=1e-4, atol=1e-4)
    print("KERNEL_OK")
</pallas_src>

<mosaic_0001>
module attributes {stable_mosaic.version = 11 : i64} {
  func.func @_bn_stats_kernel(%arg0: i32, %arg1: i32, %arg2: memref<4x16x32xf32, #tpu.memory_space<vmem>>, %arg3: memref<1x16x1xf32, #tpu.memory_space<vmem>>, %arg4: memref<1x16x1xf32, #tpu.memory_space<vmem>>) attributes {dimension_semantics = [#tpu.dimension_semantics<parallel>, #tpu.dimension_semantics<arbitrary>], iteration_bounds = array<i64: 2, 1>, scalar_prefetch = 0 : i64, scratch_operands = 0 : i64, tpu.core_type = #tpu.core_type<tc>, window_params = [{transform_indices = @transform_0, window_bounds = array<i64: 4, 16, 32>}, {transform_indices = @transform_1, window_bounds = array<i64: 1, 16, 1>}, {transform_indices = @transform_2, window_bounds = array<i64: 1, 16, 1>}]} {
    %c0_i32 = arith.constant 0 : i32
    %0 = arith.cmpi eq, %arg1, %c0_i32 : i32
    %1 = arith.extui %0 : i1 to i32
    %c0_i32_0 = arith.constant 0 : i32
    %2 = arith.cmpi ne, %1, %c0_i32_0 : i32
    scf.if %2 {
      %cst_18 = arith.constant 0.000000e+00 : f32
      %19 = vector.broadcast %cst_18 : f32 to vector<1x16x1xf32>
      %c0_19 = arith.constant 0 : index
      %c0_20 = arith.constant 0 : index
      %c0_21 = arith.constant 0 : index
      %20 = vector.load %arg3[%c0_19, %c0_20, %c0_21] : memref<1x16x1xf32, #tpu.memory_space<vmem>>, vector<1x16x1xf32>
      tpu.vector_store %arg3[%c0_19, %c0_20, %c0_21], %19 {strides = array<i32>} : memref<1x16x1xf32, #tpu.memory_space<vmem>>, vector<1x16x1xf32>,
      %cst_22 = arith.constant 0.000000e+00 : f32
      %21 = vector.broadcast %cst_22 : f32 to vector<1x16x1xf32>
      %c0_23 = arith.constant 0 : index
      %c0_24 = arith.constant 0 : index
      %c0_25 = arith.constant 0 : index
      %22 = vector.load %arg4[%c0_23, %c0_24, %c0_25] : memref<1x16x1xf32, #tpu.memory_space<vmem>>, vector<1x16x1xf32>
      tpu.vector_store %arg4[%c0_23, %c0_24, %c0_25], %21 {strides = array<i32>} : memref<1x16x1xf32, #tpu.memory_space<vmem>>, vector<1x16x1xf32>,
    } else {
    }
    %c0 = arith.constant 0 : index
    %c0_1 = arith.constant 0 : index
    %c0_2 = arith.constant 0 : index
    %3 = vector.load %arg2[%c0, %c0_1, %c0_2] : memref<4x16x32xf32, #tpu.memory_space<vmem>>, vector<4x16x32xf32>
    %cst = arith.constant dense<0.000000e+00> : vector<16x32xf32>
    %4 = vector.multi_reduction <add>, %3, %cst [0] : vector<4x16x32xf32> to vector<16x32xf32>
    %5 = arith.mulf %3, %3 : vector<4x16x32xf32>
    %cst_3 = arith.constant dense<0.000000e+00> : vector<16x32xf32>
    %6 = vector.multi_reduction <add>, %5, %cst_3 [0] : vector<4x16x32xf32> to vector<16x32xf32>
    %c0_4 = arith.constant 0 : index
    %c0_5 = arith.constant 0 : index
    %c0_6 = arith.constant 0 : index
    %7 = vector.load %arg3[%c0_4, %c0_5, %c0_6] : memref<1x16x1xf32, #tpu.memory_space<vmem>>, vector<1x16x1xf32>
    %cst_7 = arith.constant dense<0.000000e+00> : vector<16xf32>
    %8 = vector.multi_reduction <add>, %4, %cst_7 [1] : vector<16x32xf32> to vector<16xf32>
    %9 = vector.shape_cast %8 : vector<16xf32> to vector<16x1xf32>
    %10 = vector.shape_cast %9 : vector<16x1xf32> to vector<1x16x1xf32>
    %11 = arith.addf %7, %10 : vector<1x16x1xf32>
    %c0_8 = arith.constant 0 : index
    %c0_9 = arith.constant 0 : index
    %c0_10 = arith.constant 0 : index
    %12 = vector.load %arg3[%c0_8, %c0_9, %c0_10] : memref<1x16x1xf32, #tpu.memory_space<vmem>>, vector<1x16x1xf32>
    tpu.vector_store %arg3[%c0_8, %c0_9, %c0_10], %11 {strides = array<i32>} : memref<1x16x1xf32, #tpu.memory_space<vmem>>, vector<1x16x1xf32>,
    %c0_11 = arith.constant 0 : index
    %c0_12 = arith.constant 0 : index
    %c0_13 = arith.constant 0 : index
    %13 = vector.load %arg4[%c0_11, %c0_12, %c0_13] : memref<1x16x1xf32, #tpu.memory_space<vmem>>, vector<1x16x1xf32>
    %cst_14 = arith.constant dense<0.000000e+00> : vector<16xf32>
    %14 = vector.multi_reduction <add>, %6, %cst_14 [1] : vector<16x32xf32> to vector<16xf32>
    %15 = vector.shape_cast %14 : vector<16xf32> to vector<16x1xf32>
    %16 = vector.shape_cast %15 : vector<16x1xf32> to vector<1x16x1xf32>
    %17 = arith.addf %13, %16 : vector<1x16x1xf32>
    %c0_15 = arith.constant 0 : index
    %c0_16 = arith.constant 0 : index
    %c0_17 = arith.constant 0 : index
    %18 = vector.load %arg4[%c0_15, %c0_16, %c0_17] : memref<1x16x1xf32, #tpu.memory_space<vmem>>, vector<1x16x1xf32>
    tpu.vector_store %arg4[%c0_15, %c0_16, %c0_17], %17 {strides = array<i32>} : memref<1x16x1xf32, #tpu.memory_space<vmem>>, vector<1x16x1xf32>,
    return
  }
  func.func @transform_0(%arg0: i32, %arg1: i32) -> (i32, i32, i32) {
    %c1_i32 = arith.constant 1 : i32
    %0 = arith.muli %arg0, %c1_i32 : i32
    %1 = arith.addi %0, %arg1 : i32
    %c0_i32 = arith.constant 0 : i32
    %c0_i32_0 = arith.constant 0 : i32
    %c0_i32_1 = arith.constant 0 : i32
    return %1, %c0_i32, %c0_i32_0 : i32, i32, i32
  }
  func.func @transform_1(%arg0: i32, %arg1: i32) -> (i32, i32, i32) {
    %c0_i32 = arith.constant 0 : i32
    %c0_i32_0 = arith.constant 0 : i32
    %c0_i32_1 = arith.constant 0 : i32
    return %arg0, %c0_i32, %c0_i32_0 : i32, i32, i32
  }
  func.func @transform_2(%arg0: i32, %arg1: i32) -> (i32, i32, i32) {
    %c0_i32 = arith.constant 0 : i32
    %c0_i32_0 = arith.constant 0 : i32
    %c0_i32_1 = arith.constant 0 : i32
    return %arg0, %c0_i32, %c0_i32_0 : i32, i32, i32
  }
}

</mosaic_0001>

<bundles_post_ra>
// kernel: tpu_custom_call.1
= control target key start
LH: loop header
LB: loop body
LE: loop exit
PB: predicated region body
PF: predicated region fallthrough
CT: control target
= control target key end

     0   :  { %8 = vsyncpa [#allocation3], 0  ;;  %s702_s0 = inlined_call_operand.hbm [shape: f32[8,16,32], index: 0, kind: input, shape index: {}]   ;;  %s703_s1 = inlined_call_operand.vmem [shape: f32[2,16,1], index: 1, kind: output, shape index: {0}]   ;;  %s704_s2 = inlined_call_operand.vmem [shape: f32[2,16,1], index: 2, kind: output, shape index: {1}]  }
   0x1   :  { %10 = vsyncpa [#allocation3 + $0x1], 0  ;;  %s560_s9 = smov 0   ;;  %s562_s10 = smov 0  }
   0x2   :  { %s564_s11 = smov 0   ;;  %s566_s12 = smov 0  }
   0x3   :  { %s568_s13 = smov 0   ;;  %s570_s14 = smov 0  }
   0x4 LB: > { %s383_s15 = sadd.s32 4294967295, %s539_s14   ;;  %s28_s16 = sadd.s32 1, %s535_s13  ;;  %s539_s14 = sphi %s570_s14, %s16_s14   ;;  %s535_s13 = sphi %s568_s13, %s712_s13   ;;  %s531_s12 = sphi %s566_s12, %s711_s12   ;;  %s527_s11 = sphi %s564_s11, %s710_s11   ;;  %s523_s10 = sphi %s562_s10, %s709_s10   ;;  %s519_s9 = sphi %s560_s9, %s708_s9  }
   0x5   : > { %p30_p0 = scmp.ge.s32.totalorder %s28_s16, 2  ;;  %s37_s17 = sadd.s32 1, %s527_s11 }
   0x6   : > { %p44_p1 = scmp.ne.s32.totalorder %s527_s11, %s523_s10  ;;  %p45_p2 = scmp.eq.s32.totalorder %s539_s14, 0 }
   0x7   : > { %s714_s16 = smov (%p30_p0, %s28_s16), 0  ;;  %p50_p4 = scmp.ne.s32.totalorder %s523_s10, %s519_s9 }
   0x8   : > { %p596_p3 = por %p45_p2, %p44_p1  ;;  %s34_s19 = ssub.s32 %s535_s13, %s714_s16 }
   0x9   : > { %p51_p5 = scmp.eq.s32.totalorder %s383_s15, 0  ;;  %p35_p6 = scmp.eq.s32.totalorder %s34_s19, 0 }
   0xa   : > { %p409_p8 = scmp.lt.s32.totalorder %s539_s14, 2  ;;  %s126_s22 = sand.u32 1, %s527_s11  }
   0xb   : > { %p603_p7 = por %p51_p5, %p50_p4  ;;  %s400_s23 = sshll.u32 %s535_s13, 10 }
   0xc   : > { %s609_s21 = scalar_select %p35_p6, %s527_s11, %s37_s17  }
   0xd   : > { %s387_s24 = sshll.u32 %s126_s22, 6  ;;  %s138_s27 = scalar_lea.hbm %s702_s0, %s400_s23 }
   0xe   : > { %s130_s28 = scalar_lea.vmem [#allocation2], %s387_s24  ;;  %p618_p9 = pnand %p409_p8, %p596_p3 }
   0xf   : > { %s139_s29 = sshll.u32 %s130_s28, 4  ;;  %s127_s3 = scalar_lea.sflag [#allocation3], %s126_s22  ;;  %s140_s29 = int_to_ptr.vmem [resolvable:$true] %s139_s29 }
  0x10   : > { %p463_p10 = pneg %p618_p9  ;;  %s474_s4 = scalar_lea.vmem %s140_s29, 1024 }
  0x11   : > { %p475_p11 = scmp.ne.s32.totalorder %s140_s29, %s474_s4  ;;  %s541_s5 = smov [#allocation2]  }
  0x12   : > { %s479_s6 = sshll.u32 %s541_s5, 4  ;;  %s480_s6 = int_to_ptr.vmem [resolvable:$false] %s479_s6 }
  0x13   : > { %p477_p12 = pnand %p475_p11, %p463_p10  ;;  %s481_s7 = scalar_lea.vmem %s480_s6, 2048 }
  0x14   : > { %p482_p0 = scmp.lt.s32.totalorder %s140_s29, %s480_s6  ;;  %p483_p1 = scmp.lt.s32.totalorder %s481_s7, %s474_s4 }
  0x15   : > { %p478_p13 = pneg %p477_p12 }
  0x16   : > { %p484_p2 = por %p483_p1, %p482_p0 }
  0x18   : > { %p485_p3 = pnand %p484_p2, %p478_p13 }
  0x1a   : > { %488 = shalt.err (!%p485_p3)
}
  0x1b   : > { %s542_s8 = smov 128   ;;  %s543_s9 = smov 8  }
  0x1c   : > { %408 = dma.hbm_to_vmem [thread:$0]  (!%p618_p9), %s138_s27, 1024, %s140_s29, %s127_s3, %s542_s8, %s542_s8, %s543_s9  }
  0x1d   : > { %p391_p4 = scmp.ge.s32.totalorder %s539_s14, 1  ;;  %p147_p5 = scmp.lt.s32.totalorder %s539_s14, 3 }
  0x1f   : > { %p148_p6 = pnand %p391_p4, %p147_p5 }
  0x20   : > { %s153_s15 = sand.u32 (!%p148_p6), 1, %s523_s10  }
  0x21   : > { %151 = sbr.rel (%p148_p6) target bundleno = 196 (0xc4), region = 24  ;;  %s392_s17 = sshll.u32 (!%p148_p6), %s153_s15, 6 }
  0x22   : > { %s154_s18 = scalar_lea.sflag (!%p148_p6), [#allocation3], %s153_s15  ;;  %s157_s19 = scalar_lea.vmem (!%p148_p6), [#allocation2], %s392_s17 }
  0x26   : > { %514 = dma.done.wait (%p603_p7), %s154_s18, 1024  }
  0x27   : > { %516 = vsyncadd (%p603_p7), %s154_s18, 4294966272  ;;  %p185_p8 = scmp.lt.s32.totalorder %s531_s12, 1  ;;  %vm199_vm0 = vcmask 7168   ;;  %vm212_vm1 = vcmask 261120   ;;  %v544_v0 = vmov 0.0   ;;  %v204_v1 = vld [vmem:[%s157_s19] sm:$0xff] }
  0x28   : > { %v206_v2 = vld [vmem:[%s157_s19 + $0x10] sm:$0xff]  ;;  %v208_v3 = vld [vmem:[%s157_s19 + $0x20] sm:$0xff]  ;;  %v227_v5 = vmul.f32 %v204_v1, %v204_v1  ;;  %v213_v8 = vsel %vm212_vm1, %v204_v1, 0.0  ;;  %v205_v9 = vld [vmem:[%s157_s19 + $0x8] sm:$0xff] }
  0x29   : > { %s716_s12 = smov (!%p185_p8, %s531_s12), 1  ;;  %v210_v4 = vld [vmem:[%s157_s19 + $0x30] sm:$0xff]  ;;  %v229_v6 = vmul.f32 %v206_v2, %v206_v2  ;;  %v231_v7 = vmul.f32 %v208_v3, %v208_v3  ;;  %v207_v10 = vld [vmem:[%s157_s19 + $0x18] sm:$0xff]  ;;  %v214_v12 = vsel %vm212_vm1, %v206_v2, 0.0  ;;  %v216_v13 = vsel %vm212_vm1, %v208_v3, 0.0  ;;  %v209_v15 = vld [vmem:[%s157_s19 + $0x28] sm:$0xff] }
  0x2a   : > { %s401_s22 = sshll.u32 %s716_s12, 4  ;;  %v233_v11 = vmul.f32 %v210_v4, %v210_v4  ;;  %v218_v14 = vsel %vm212_vm1, %v210_v4, 0.0  ;;  %v211_v16 = vld [vmem:[%s157_s19 + $0x38] sm:$0xff]  ;;  %v235_v17 = vsel %vm212_vm1, %v227_v5, 0.0  ;;  %v215_v20 = vadd.f32 %v214_v12, %v213_v8 }
  0x2b   : > { %s643_s25 = scalar_lea.vmem %s704_s2, %s401_s22  ;;  %v236_v18 = vsel %vm212_vm1, %v229_v6, 0.0  ;;  %v238_v19 = vsel %vm212_vm1, %v231_v7, 0.0  ;;  %v228_v23 = vmul.f32 %v205_v9, %v205_v9  ;;  %v230_v24 = vmul.f32 %v207_v10, %v207_v10  ;;  %s189_s27 = scalar_lea.vmem %s703_s1, %s401_s22 }
  0x2c   : > { %202 = vst.msk [vmem:[%s643_s25] sm:$0xff] %vm199_vm0, %v544_v0  ;;  %203 = vst.msk [vmem:[%s643_s25 + $0x8] sm:$0xff] %vm199_vm0, %v544_v0  ;;  %v237_v21 = vadd.f32 %v236_v18, %v235_v17  ;;  %v240_v22 = vsel %vm212_vm1, %v233_v11, 0.0  ;;  %v217_v25 = vadd.f32 %v216_v13, %v215_v20  ;;  %v232_v26 = vmul.f32 %v209_v15, %v209_v15 }
  0x2d   : > { %v234_v27 = vmul.f32 %v211_v16, %v211_v16  ;;  %v220_v28 = vsel %vm212_vm1, %v205_v9, 0.0  ;;  %v242_v30 = vsel %vm212_vm1, %v228_v23, 0.0  ;;  %v243_v31 = vsel %vm212_vm1, %v230_v24, 0.0  ;;  %200 = vst.msk [vmem:[%s189_s27] sm:$0xff] %vm199_vm0, %v544_v0  ;;  %201 = vst.msk [vmem:[%s189_s27 + $0x8] sm:$0xff] %vm199_vm0, %v544_v0 }
  0x2e   : > { %v239_v29 = vadd.f32 %v238_v19, %v237_v21  ;;  %v221_v32 = vsel %vm212_vm1, %v207_v10, 0.0  ;;  %v219_v33 = vadd.f32 %v218_v14, %v217_v25  ;;  %v244_v34 = vadd.f32 %v243_v31, %v242_v30 }
  0x2f   : > { %v245_v35 = vsel %vm212_vm1, %v232_v26, 0.0  ;;  %v247_v37 = vsel %vm212_vm1, %v234_v27, 0.0  ;;  %v222_v38 = vadd.f32 %v221_v32, %v220_v28  ;;  %v223_v39 = vsel %vm212_vm1, %v209_v15, 0.0 }
  0x30   : > { %v241_v36 = vadd.f32 %v240_v22, %v239_v29  ;;  %v251_v40 = vsel %vm212_vm1, %v219_v33, 0.0  ;;  %v246_v41 = vadd.f32 %v245_v35, %v244_v34  ;;  %v225_v42 = vsel %vm212_vm1, %v211_v16, 0.0 }
  0x31   : > { %252 = vadd.xlane.f32.xlu0 %v251_v40  ;;  %v224_v44 = vadd.f32 %v223_v39, %v222_v38 }
  0x32   : > { %v264_v43 = vsel %vm212_vm1, %v241_v36, 0.0  ;;  %v248_v45 = vadd.f32 %v247_v37, %v246_v41 }
  0x33   : > { %265 = vadd.xlane.f32.xlu1 %v264_v43  ;;  %v226_v46 = vadd.f32 %v225_v42, %v224_v44  ;;  %v262_v50 = vld [vmem:[%s643_s25] sm:$0xff]  ;;  %v263_v55 = vld [vmem:[%s643_s25 + $0x8] sm:$0xff] }
  0x34   : > { %v267_v47 = vsel %vm212_vm1, %v248_v45, 0.0  ;;  %v249_v49 = vld [vmem:[%s189_s27] sm:$0xff]  ;;  %v250_v56 = vld [vmem:[%s189_s27 + $0x8] sm:$0xff] }
  0x35   : > { %v254_v48 = vsel %vm212_vm1, %v226_v46, 0.0 }
  0x36   : > { %255 = vadd.xlane.f32.xlu0 %v254_v48 }
  0x37   : > { %268 = vadd.xlane.f32.xlu1 %v267_v47 }
  0xba   : > { %v253_v51 = vpop.xlane.xlu0 %252 }
  0xbb   : > { %v257_v53 = vadd.f32 %v253_v51, %v249_v49 }
  0xbc   : > { %v266_v52 = vpop.xlane.xlu1 %265 }
  0xbd   : > { %v270_v54 = vadd.f32 %v266_v52, %v262_v50  ;;  %260 = vst.msk [vmem:[%s189_s27] sm:$0xff] %vm199_vm0, %v257_v53 }
  0xbf   : > { %272 = vst.msk [vmem:[%s643_s25] sm:$0xff] %vm199_vm0, %v270_v54  ;;  %v256_v58 = vpop.xlane.xlu0 %255 }
  0xc0   : > { %v269_v57 = vpop.xlane.xlu1 %268  ;;  %v258_v60 = vadd.f32 %v256_v58, %v250_v56 }
  0xc1   : > { %v271_v59 = vadd.f32 %v269_v57, %v263_v55 }
  0xc2   : > { %261 = vst.msk [vmem:[%s189_s27 + $0x8] sm:$0xff] %vm199_vm0, %v258_v60 }
  0xc3   : > { %273 = vst.msk [vmem:[%s643_s25 + $0x8] sm:$0xff] %vm199_vm0, %v271_v59 }
  0xc4 PF: > { %s16_s14 = sadd.s32 1, %s539_s14   ;;  %s708_s9 = smov %s523_s10 }
  0xc5   : > { %p13_p7 = scmp.ge.s32.totalorder %s16_s14, 4   ;;  %s709_s10 = smov %s527_s11 }
  0xc6   : > { %s710_s11 = smov %s609_s21  ;;  %s711_s12 = smov %s535_s13 }
  0xc7   : > { %s712_s13 = smov %s714_s16  ;;  %15 = sbr.rel (!%p13_p7) target bundleno = 4 (0x4), region = 80 }
  0xcc   :  { %311 = vsyncpa [#allocation3], 1 }
  0xcd   :  { %313 = vsyncpa [#allocation3 + $0x1], 1 }

</bundles_post_ra>
